<compile_context>
chip_gen: v7x
topology: tpu7x:2x2x1
jax: 0.10.0
libtpu: 0.0.40
codegen_flags: <defaults>
</compile_context>

<pallas_src>
import numpy as np
import jax
import jax.numpy as jnp
from jax.experimental import pallas as pl
from jax.experimental.pallas import tpu as pltpu

# -------- synthetic config (small, deterministic) ----------------------------
N_STATE = 4          # config.n_state
N_ACTION = 3         # config.n_action
NET_ARCH = (32, 32)  # config.net_arch -> n_proj = 32, one hidden layer of 32
C_SIZE = 2           # intent size (hard-coded 2 in ProductNetwork)
BATCH = 2

SUBLANE = 8          # f32 sublane height
X_IN = 8             # merged streamed row: [state(4) | intent(2) | 1 | 0]
OUT_PAD = 8          # output lanes padded to 8 (full-array last dim -> legal)


def _round_up(x, m):
    return (x + m - 1) // m * m


# ------------------------------- kernel --------------------------------------
def product_network_kernel(x_ref,      # (TB, X_IN)   streamed activations
                           w_aug_ref,  # (3*X_IN, n_proj) folded hypernet weight
                           hid_w_ref,  # (n_proj, h1) hids Linear, pre-transposed
                           hid_b_ref,  # (1, h1)
                           op_w_ref,   # (h1, OUT_PAD) op Linear, transposed + padded
                           op_b_ref,   # (1, OUT_PAD)
                           out_ref):   # (TB, OUT_PAD)
    x = x_ref[...]                     # (TB, 8) = [state | intent | 1 | 0]
    i0 = x[:, 4:5]
    i1 = x[:, 5:6]

    # Entire bilinear fast-weight layer as a single K=24 MXU matmul:
    #   out1 = relu(concat([i0*x, i1*x, x], axis=1) @ W_aug)
    # W_aug rows hold Ww0/bw0, Ww1/bw1, Wb/bb at the matching lane positions
    # (the intent lanes and the trailing zero lane map to zero rows).
    x_aug = jnp.concatenate([i0 * x, i1 * x, x], axis=1)            # (TB, 24)
    out1 = jnp.maximum(
        jnp.dot(x_aug, w_aug_ref[...], preferred_element_type=jnp.float32), 0.0)

    # Hidden MLP layer (Linear + ReLU), weights already transposed.
    h = jnp.maximum(
        jnp.dot(out1, hid_w_ref[...], preferred_element_type=jnp.float32)
        + hid_b_ref[...], 0.0)

    # Output layer (narrow 8-lane padded output; real cols sliced in wrapper).
    out_ref[...] = (jnp.dot(h, op_w_ref[...], preferred_element_type=jnp.float32)
                    + op_b_ref[...])


# --------------------------- one-time param relayout --------------------------
def prepare_params(params):
    """Call once per parameter set; returns kernel-ready, VMEM-resident arrays."""
    n_proj, h1 = NET_ARCH

    ww = params["hyper_Ww"].reshape(N_STATE, n_proj, C_SIZE)   # [k, j, c]
    ww = jnp.transpose(ww, (2, 0, 1))                          # (C, n_state, n_proj)
    wbias = params["hyper_Wb"].reshape(N_STATE, n_proj)        # (n_state, n_proj)
    bw = params["hyper_bw"].T                                  # (C, n_proj)
    bb = params["hyper_bb"]                                    # (1, n_proj)

    # Rows of W_aug line up with the kernel's x_aug = [i0*x | i1*x | x] lanes.
    one_lane = N_STATE + C_SIZE                                # lane 6 carries 1.0
    w_aug = jnp.zeros((3 * X_IN, n_proj), jnp.float32)
    w_aug = w_aug.at[0:N_STATE, :].set(ww[0])                            # i0 * state
    w_aug = w_aug.at[one_lane, :].set(bw[0])                             # i0 * 1
    w_aug = w_aug.at[X_IN:X_IN + N_STATE, :].set(ww[1])                  # i1 * state
    w_aug = w_aug.at[X_IN + one_lane, :].set(bw[1])                      # i1 * 1
    w_aug = w_aug.at[2 * X_IN:2 * X_IN + N_STATE, :].set(wbias)          # state
    w_aug = w_aug.at[2 * X_IN + one_lane, :].set(bb[0])                  # 1 -> bb

    op_w = jnp.zeros((h1, OUT_PAD), jnp.float32).at[:, :N_ACTION].set(params["op_w"].T)
    op_b = jnp.zeros((1, OUT_PAD), jnp.float32).at[:, :N_ACTION].set(params["op_b"])

    return {
        "w_aug": w_aug,                 # (24, n_proj)
        "hid_w": params["hid_w"].T,     # (n_proj, h1)
        "hid_b": params["hid_b"],       # (1, h1)
        "op_w": op_w,                   # (h1, 8)
        "op_b": op_b,                   # (1, 8)
    }


# ------------------------------- wrapper --------------------------------------
def product_network(state, intent, kparams, *, tile_batch=4096):
    """ProductNetwork forward via one batched Pallas call.

    Rows are streamed through a 1-D batch grid with large sublane-aligned
    tiles; all weights stay VMEM-resident across grid steps. Output is
    computed 8-lane wide and the real n_action columns sliced here.
    """
    batch = state.shape[0]

    # Merge streamed activations into one 8-lane row per sample (one DMA/step).
    x = jnp.concatenate(
        [state.astype(jnp.float32), intent.astype(jnp.float32),
         jnp.ones((batch, 1), jnp.float32), jnp.zeros((batch, 1), jnp.float32)],
        axis=1)                                                    # (B, 8)

    # Batch tiling: big tiles (per-step overhead ~0.35us), but keep >=4 grid
    # steps when the batch allows it so the "parallel" axis can shard across
    # both TensorCores on v7x.  VMEM stays tiny (x/out tiles are <=256 KiB).
    b_al = _round_up(batch, SUBLANE)
    tb = min(tile_batch, max(SUBLANE, _round_up(pl.cdiv(b_al, 4), SUBLANE)))
    b_pad = _round_up(b_al, tb)
    if b_pad != batch:
        x = jnp.pad(x, ((0, b_pad - batch), (0, 0)))
    grid = (b_pad // tb,)

    def resident(arr):
        nd = arr.ndim
        return pl.BlockSpec(arr.shape, lambda i, _nd=nd: (0,) * _nd)

    out_padded = pl.pallas_call(
        product_network_kernel,
        out_shape=jax.ShapeDtypeStruct((b_pad, OUT_PAD), jnp.float32),
        grid=grid,
        in_specs=[
            pl.BlockSpec((tb, X_IN), lambda i: (i, 0)),   # streamed activations
            resident(kparams["w_aug"]),
            resident(kparams["hid_w"]),
            resident(kparams["hid_b"]),
            resident(kparams["op_w"]),
            resident(kparams["op_b"]),
        ],
        out_specs=pl.BlockSpec((tb, OUT_PAD), lambda i: (i, 0)),
        compiler_params=pltpu.CompilerParams(
            dimension_semantics=("parallel",)),          # v7x: 2 TCs share batch
    )(x, kparams["w_aug"], kparams["hid_w"], kparams["hid_b"],
      kparams["op_w"], kparams["op_b"])

    return out_padded[:batch, :N_ACTION]


# --------------------------- reference (pure JAX) ------------------------------
def product_network_ref(state, intent, params):
    w = intent @ params["hyper_Ww"].T + params["hyper_Wb"]
    b = intent @ params["hyper_bw"].T + params["hyper_bb"]
    n_proj = b.shape[1]
    W = w.reshape(state.shape[0], N_STATE, n_proj)
    out1 = jnp.maximum(jnp.einsum("bk,bkj->bj", state, W) + b, 0.0)
    h = jnp.maximum(out1 @ params["hid_w"].T + params["hid_b"], 0.0)
    return h @ params["op_w"].T + params["op_b"]


# ------------------------------- params ---------------------------------------
def make_params(key):
    n_proj, h1 = NET_ARCH
    gain = np.sqrt(2.0)  # relu gain for hids (hyper layers use gain=1.0)
    ks = jax.random.split(key, 4)
    ortho = jax.nn.initializers.orthogonal()

    def orth(k, shape, g):
        return (g * ortho(k, shape, jnp.float32)).astype(jnp.float32)

    # TODO(synk): PyTorch leaves self.op at default kaiming-uniform init (it is
    # not touched by init_params); deterministic orthogonal init is used here —
    # forward semantics are unaffected by the init scheme.
    return {
        "hyper_Ww": orth(ks[0], (n_proj * N_STATE, C_SIZE), 1.0),
        "hyper_Wb": jnp.zeros((1, n_proj * N_STATE), jnp.float32),
        "hyper_bw": orth(ks[1], (n_proj, C_SIZE), 1.0),
        "hyper_bb": jnp.zeros((1, n_proj), jnp.float32),
        "hid_w":    orth(ks[2], (h1, n_proj), gain),
        "hid_b":    jnp.zeros((1, h1), jnp.float32),
        "op_w":     orth(ks[3], (N_ACTION, h1), gain),
        "op_b":     jnp.zeros((1, N_ACTION), jnp.float32),
    }


if __name__ == "__main__":
    key = jax.random.PRNGKey(0)
    k_params, k_state, k_intent = jax.random.split(key, 3)
    params = make_params(k_params)
    kparams = prepare_params(params)   # hoisted: weight relayout runs once, not per call

    state = jax.random.normal(k_state, (BATCH, N_STATE), jnp.float32)
    intent = jax.random.normal(k_intent, (BATCH, C_SIZE), jnp.float32)

    out = jax.block_until_ready(product_network(state, intent, kparams))

    ref = product_network_ref(state, intent, params)
    np.testing.assert_allclose(np.asarray(out), np.asarray(ref), rtol=1e-5, atol=1e-5)

    print("KERNEL_OK")
</pallas_src>

<mosaic_0001>
module attributes {stable_mosaic.version = 11 : i64} {
  func.func @product_network_kernel(%arg0: i32, %arg1: memref<8x8xf32, #tpu.memory_space<vmem>>, %arg2: memref<24x32xf32, #tpu.memory_space<vmem>>, %arg3: memref<32x32xf32, #tpu.memory_space<vmem>>, %arg4: memref<1x32xf32, #tpu.memory_space<vmem>>, %arg5: memref<32x8xf32, #tpu.memory_space<vmem>>, %arg6: memref<1x8xf32, #tpu.memory_space<vmem>>, %arg7: memref<8x8xf32, #tpu.memory_space<vmem>>) attributes {dimension_semantics = [#tpu.dimension_semantics<parallel>], iteration_bounds = array<i64: 1>, scalar_prefetch = 0 : i64, scratch_operands = 0 : i64, tpu.core_type = #tpu.core_type<tc>, window_params = [{transform_indices = @transform_0, window_bounds = array<i64: 8, 8>}, {pipeline_mode = #tpu.pipeline_mode<synchronous>, transform_indices = @transform_1, window_bounds = array<i64: 24, 32>}, {pipeline_mode = #tpu.pipeline_mode<synchronous>, transform_indices = @transform_2, window_bounds = array<i64: 32, 32>}, {pipeline_mode = #tpu.pipeline_mode<synchronous>, transform_indices = @transform_3, window_bounds = array<i64: 1, 32>}, {pipeline_mode = #tpu.pipeline_mode<synchronous>, transform_indices = @transform_4, window_bounds = array<i64: 32, 8>}, {pipeline_mode = #tpu.pipeline_mode<synchronous>, transform_indices = @transform_5, window_bounds = array<i64: 1, 8>}, {transform_indices = @transform_6, window_bounds = array<i64: 8, 8>}]} {
    %c0 = arith.constant 0 : index
    %c0_0 = arith.constant 0 : index
    %0 = vector.load %arg1[%c0, %c0_0] : memref<8x8xf32, #tpu.memory_space<vmem>>, vector<8x8xf32>
    %1 = vector.extract_strided_slice %0 {offsets = [0, 4], sizes = [8, 1], strides = [1, 1]} : vector<8x8xf32> to vector<8x1xf32>
    %2 = vector.extract_strided_slice %0 {offsets = [0, 5], sizes = [8, 1], strides = [1, 1]} : vector<8x8xf32> to vector<8x1xf32>
    %3 = vector.broadcast %1 : vector<8x1xf32> to vector<8x8xf32>
    %4 = arith.mulf %3, %0 : vector<8x8xf32>
    %5 = vector.broadcast %2 : vector<8x1xf32> to vector<8x8xf32>
    %6 = arith.mulf %5, %0 : vector<8x8xf32>
    %7 = tpu.concatenate %4, %6, %0 in 1 : vector<8x8xf32>, vector<8x8xf32>, vector<8x8xf32> -> vector<8x24xf32>
    %c0_1 = arith.constant 0 : index
    %c0_2 = arith.constant 0 : index
    %8 = vector.load %arg2[%c0_1, %c0_2] : memref<24x32xf32, #tpu.memory_space<vmem>>, vector<24x32xf32>
    %cst = arith.constant dense<0.000000e+00> : vector<8x32xf32>
    %9 = tpu.matmul %7, %8, %cst {dimension_numbers = #tpu.dot_dimension_numbers<[1], [0], [0], [1], [0, 0, 1, 1], [], []>} : vector<8x24xf32>, vector<24x32xf32>, vector<8x32xf32> -> vector<8x32xf32>
    %cst_3 = arith.constant 0.000000e+00 : f32
    %10 = vector.broadcast %cst_3 : f32 to vector<8x32xf32>
    %11 = arith.maximumf %9, %10 : vector<8x32xf32>
    %c0_4 = arith.constant 0 : index
    %c0_5 = arith.constant 0 : index
    %12 = vector.load %arg3[%c0_4, %c0_5] : memref<32x32xf32, #tpu.memory_space<vmem>>, vector<32x32xf32>
    %cst_6 = arith.constant dense<0.000000e+00> : vector<8x32xf32>
    %13 = tpu.matmul %11, %12, %cst_6 {dimension_numbers = #tpu.dot_dimension_numbers<[1], [0], [0], [1], [0, 0, 1, 1], [], []>} : vector<8x32xf32>, vector<32x32xf32>, vector<8x32xf32> -> vector<8x32xf32>
    %c0_7 = arith.constant 0 : index
    %c0_8 = arith.constant 0 : index
    %14 = vector.load %arg4[%c0_7, %c0_8] : memref<1x32xf32, #tpu.memory_space<vmem>>, vector<1x32xf32>
    %15 = vector.broadcast %14 : vector<1x32xf32> to vector<8x32xf32>
    %16 = arith.addf %13, %15 : vector<8x32xf32>
    %cst_9 = arith.constant 0.000000e+00 : f32
    %17 = vector.broadcast %cst_9 : f32 to vector<8x32xf32>
    %18 = arith.maximumf %16, %17 : vector<8x32xf32>
    %c0_10 = arith.constant 0 : index
    %c0_11 = arith.constant 0 : index
    %19 = vector.load %arg5[%c0_10, %c0_11] : memref<32x8xf32, #tpu.memory_space<vmem>>, vector<32x8xf32>
    %cst_12 = arith.constant dense<0.000000e+00> : vector<8x8xf32>
    %20 = tpu.matmul %18, %19, %cst_12 {dimension_numbers = #tpu.dot_dimension_numbers<[1], [0], [0], [1], [0, 0, 1, 1], [], []>} : vector<8x32xf32>, vector<32x8xf32>, vector<8x8xf32> -> vector<8x8xf32>
    %c0_13 = arith.constant 0 : index
    %c0_14 = arith.constant 0 : index
    %21 = vector.load %arg6[%c0_13, %c0_14] : memref<1x8xf32, #tpu.memory_space<vmem>>, vector<1x8xf32>
    %22 = vector.broadcast %21 : vector<1x8xf32> to vector<8x8xf32>
    %23 = arith.addf %20, %22 : vector<8x8xf32>
    %c0_15 = arith.constant 0 : index
    %c0_16 = arith.constant 0 : index
    %24 = vector.load %arg7[%c0_15, %c0_16] : memref<8x8xf32, #tpu.memory_space<vmem>>, vector<8x8xf32>
    tpu.vector_store %arg7[%c0_15, %c0_16], %23 {strides = array<i32>} : memref<8x8xf32, #tpu.memory_space<vmem>>, vector<8x8xf32>,
    return
  }
  func.func @transform_0(%arg0: i32) -> (i32, i32) {
    %c0_i32 = arith.constant 0 : i32
    %c0_i32_0 = arith.constant 0 : i32
    return %arg0, %c0_i32 : i32, i32
  }
  func.func @transform_1(%arg0: i32) -> (i32, i32) {
    %c0_i32 = arith.constant 0 : i32
    %c0_i32_0 = arith.constant 0 : i32
    %c0_i32_1 = arith.constant 0 : i32
    return %c0_i32, %c0_i32_0 : i32, i32
  }
  func.func @transform_2(%arg0: i32) -> (i32, i32) {
    %c0_i32 = arith.constant 0 : i32
    %c0_i32_0 = arith.constant 0 : i32
    %c0_i32_1 = arith.constant 0 : i32
    return %c0_i32, %c0_i32_0 : i32, i32
  }
  func.func @transform_3(%arg0: i32) -> (i32, i32) {
    %c0_i32 = arith.constant 0 : i32
    %c0_i32_0 = arith.constant 0 : i32
    %c0_i32_1 = arith.constant 0 : i32
    return %c0_i32, %c0_i32_0 : i32, i32
  }
  func.func @transform_4(%arg0: i32) -> (i32, i32) {
    %c0_i32 = arith.constant 0 : i32
    %c0_i32_0 = arith.constant 0 : i32
    %c0_i32_1 = arith.constant 0 : i32
    return %c0_i32, %c0_i32_0 : i32, i32
  }
  func.func @transform_5(%arg0: i32) -> (i32, i32) {
    %c0_i32 = arith.constant 0 : i32
    %c0_i32_0 = arith.constant 0 : i32
    %c0_i32_1 = arith.constant 0 : i32
    return %c0_i32, %c0_i32_0 : i32, i32
  }
  func.func @transform_6(%arg0: i32) -> (i32, i32) {
    %c0_i32 = arith.constant 0 : i32
    %c0_i32_0 = arith.constant 0 : i32
    return %arg0, %c0_i32 : i32, i32
  }
}

</mosaic_0001>

<bundles_post_ra>
// kernel: tpu_custom_call.1
= control target key start
LH: loop header
LB: loop body
LE: loop exit
PB: predicated region body
PF: predicated region fallthrough
CT: control target
= control target key end

     0   :  { %11 = vsyncpa [#allocation3], 0  ;;  %s560_s0 = inlined_call_operand.vmem [shape: f32[8,8], index: 0, kind: input, shape index: {}]   ;;  %s561_s1 = inlined_call_operand.hbm [shape: f32[24,32], index: 1, kind: input, shape index: {}]   ;;  %s562_s2 = inlined_call_operand.vmem [shape: f32[32,32], index: 2, kind: input, shape index: {}]   ;;  %s563_s3 = inlined_call_operand.vmem [shape: f32[1,32], index: 3, kind: input, shape index: {}]   ;;  %s564_s4 = inlined_call_operand.vmem [shape: f32[32,8], index: 4, kind: input, shape index: {}]   ;;  %s565_s5 = inlined_call_operand.vmem [shape: f32[1,8], index: 5, kind: input, shape index: {}]   ;;  %s566_s6 = inlined_call_operand.hbm [shape: f32[8,8], index: 6, kind: output, shape index: {}]  }
   0x1   :  { %12 = vsyncpa [#allocation4], 0  ;;  %s451_s21 = smov [#allocation2]   ;;  %s403_s25 = scalar_lea.hbm %s561_s1, 384 }
   0x2   :  { %s20_s22 = sshll.u32 %s451_s21, 4  ;;  %p404_p0 = scmp.ne.s32.totalorder %s561_s1, %s403_s25  ;;  %s21_s22 = int_to_ptr.vmem [resolvable:$true] %s20_s22 }
   0x3   :  { %p407_p1 = scmp.lt.u32.totalorder %s403_s25, %s561_s1 }
   0x5   :  { %p409_p2 = pnand %p407_p1, %p404_p0 }
   0x7   :  { %412 = shalt.err (!%p409_p2)
}
   0x8   :  { %s413_s30 = scalar_lea.vmem %s21_s22, 384  ;;  %p418_p4 = scmp.lt.s32.totalorder %s21_s22, %s21_s22 }
   0x9   :  { %p414_p3 = scmp.ne.s32.totalorder %s21_s22, %s413_s30  ;;  %p419_p5 = scmp.lt.s32.totalorder %s413_s30, %s413_s30 }
   0xb   :  { %p420_p6 = por %p419_p5, %p418_p4 }
   0xd   :  { %p421_p7 = pnand %p420_p6, %p414_p3 }
   0xf   :  { %424 = shalt.err (!%p421_p7)
}
  0x10   :  { %s452_s7 = smov 128   ;;  %s453_s8 = smov 8  }
  0x11   :  { %26 = dma.hbm_to_vmem [thread:$0]  %s561_s1, 384, %s21_s22, [#allocation3], %s452_s7, %s452_s7, %s453_s8  }
  0x12   :  { %447 = dma.done.wait [#allocation3], 384  }
  0x13   :  { %448 = vsyncadd [#allocation3], 4294966912  ;;  %v454_v0 = vmov 5   ;;  %v38_v1 = vld [vmem:[%s560_s0] sm:$0xff]  ;;  %v455_v2 = vmov 4   ;;  %v456_v3 = vmov 0.0|0.0  }
  0x14   :  { %400 = vset.pattern.permute.xlu0 %v454_v0  ;;  %375 = vmatprep.subr.bf16.mxu0 %v456_v3  ;;  %v61_v4 = vld [vmem:[#allocation2] sm:$0xff]  ;;  %v62_v5 = vld [vmem:[#allocation2 + $0x8] sm:$0xff]  ;;  %v457_v7 = vmov 0.0   ;;  %v63_v8 = vld [vmem:[#allocation2 + $0x10] sm:$0xff]  ;;  %vm458_vm0 = vmmov 0   ;;  %s459_s15 = smov 16  }
  0x15   :  { %46 = vperm.xlu0 %400, %v38_v1   ;;  %378 = vmatprep.subr.bf16.mxu1 %v456_v3  ;;  %v376_v6 = vpack.c.bf16 %v62_v5, %v61_v4  ;;  %v139_v9 = vld [vmem:[%s562_s2] sm:$0xff]  ;;  %v140_v10 = vld [vmem:[%s562_s2 + $0x8] sm:$0xff]  ;;  %vm57_vm1 = vcmask 64512   ;;  %vm59_vm2 = vcmask 130048   ;;  %vm64_vm3 = vcmask 195584   ;;  %v141_v20 = vld [vmem:[%s562_s2 + $0x10] sm:$0xff] }
  0x16   :  { %350 = vmatprep.mubr.msk.f32.mxu0 %vm458_vm0, %v457_v7  ;;  %361 = vmatprep.mubr.msk.f32.mxu1 %vm458_vm0, %v457_v7  ;;  %v379_v11 = vpack.c.bf16 %v140_v10, %v139_v9  ;;  %v142_v21 = vld [vmem:[%s562_s2 + $0x18] sm:$0xff]  ;;  %v225_v23 = vld [vmem:[%s564_s4] sm:$0xff]  ;;  %v226_v24 = vld [vmem:[%s564_s4 + $0x8] sm:$0xff]  ;;  %vm150_vm4 = vcmask 261120   ;;  %s460_s7 = smov [#allocation5]  }
  0x17   :  { %377 = vmatpush3.bf16.msra.mxu0 %v376_v6  ;;  %v382_v22 = vpack.c.bf16 %v142_v21, %v141_v20  ;;  %v385_v25 = vpack.c.bf16 %v226_v24, %v225_v23  ;;  %v227_v29 = vld [vmem:[%s564_s4 + $0x10] sm:$0xff]  ;;  %v228_v30 = vld [vmem:[%s564_s4 + $0x18] sm:$0xff]  ;;  %v326_v32 = vld [vmem:[%s563_s3] ss:$0 sm:$0xff] }
  0x18   :  { %348 = vmatprep.subr.mxu0 %v457_v7  ;;  %380 = vmatpush3.bf16.msra.mxu1 %v379_v11  ;;  %v388_v31 = vpack.c.bf16 %v228_v30, %v227_v29  ;;  %v328_v37 = vld [vmem:[%s565_s5] ss:$0 sm:$0xff] }
  0x19   :  { %401 = vset.pattern.permute.xlu0 %v455_v2  ;;  %381 = vmatprep.subr.bf16.mxu1 %v456_v3 }
  0x1a   :  { %41 = vperm.xlu0 %401, %v38_v1  }
  0x1b   :  { %349 = vmatpush3.msra.mxu0 %v63_v8 }
  0x1c   :  { %384 = vmatprep.subr.bf16.mxu0 %v456_v3  ;;  %383 = vmatpush3.bf16.msra.mxu1 %v382_v22 }
  0x1e   :  { %402 = vset.pattern.permute.xlu0 %v454_v0 }
  0x94   :  { %v47_v12 = vpop.permute.xlu0 %46 }
  0x95   :  { %v49_v13 = vmul.f32 %v47_v12, %v38_v1 }
  0x97   :  { %51 = vrot.lane.b32.xlu1 %v49_v13, %s453_s8  ;;  %s316_s8 = sshll.u32 %s460_s7, 4  ;;  %s317_s8 = int_to_ptr.vmem [resolvable:$true] %s316_s8 }
  0x98   :  { %s425_s4 = scalar_lea.vmem %s317_s8, 128  ;;  %p430_p9 = scmp.lt.s32.totalorder %s317_s8, %s317_s8 }
  0x99   :  { %v42_v14 = vpop.permute.xlu0 %41  ;;  %p426_p8 = scmp.ne.s32.totalorder %s317_s8, %s425_s4  ;;  %p431_p10 = scmp.lt.s32.totalorder %s425_s4, %s425_s4 }
  0x9a   :  { %v44_v15 = vmul.f32 %v42_v14, %v38_v1 }
  0x9b   :  { %54 = vrot.lane.b32.xlu1 %v38_v1, %s459_s15  ;;  %p432_p11 = por %p431_p10, %p430_p9 }
  0x9d   :  { %p433_p12 = pnand %p432_p11, %p426_p8 }
 0x109   :  { %v52_v16 = vpop.permute.xlu1 %51 }
 0x10a   :  { %v58_v17 = vsel %vm57_vm1, %v44_v15, %v52_v16 }
 0x10d   :  { %v55_v18 = vpop.permute.xlu1 %54 }
 0x10e   :  { %v60_v19 = vsel %vm59_vm2, %v58_v17, %v55_v18 }
 0x10f   :  { %351 = vmatmul.mubr.msk.f32.vlgmr.msra.gmra.mrb[0].mxu0 %vm64_vm3, %v60_v19 }
 0x110   :  { %372 = vmatprep.mubr.msk.f32.mxu0 %vm458_vm0, %v457_v7  ;;  %386 = vmatpush3.bf16.msra.mxu0 %v385_v25 }
 0x111   :  { %387 = vmatprep.subr.bf16.mxu0 %v456_v3 }
 0x114   :  { %389 = vmatpush3.bf16.msra.mxu0 %v388_v31 }
 0x1e2   :  { %v134_v26 = vpop.f32.mrb[0].mxu0 }
 0x1e3   :  { %v138_v27 = vmax.f32 %v134_v26, 0.0  ;;  %v352_v28 = vpop.f32.mrb[1].mxu0 }
 0x1e5   :  { %362 = vmatmul.mubr.msk.f32.vlgmr.msra.gmra.mrb[0].mxu1 %vm150_vm4, %v138_v27 }
 0x2b8   :  { %v220_v33 = vpop.f32.mrb[0].mxu1 }
 0x2b9   :  { %v221_v34 = vadd.f32 %v326_v32, %v220_v33  ;;  %v363_v35 = vpop.f32.mrb[1].mxu1 }
 0x2bb   :  { %v224_v36 = vmax.f32 %v221_v34, 0.0 }
 0x2bd   :  { %373 = vmatmul.mubr.msk.f32.vlgmr.msra.gmra.mrb[2].mxu0 %vm150_vm4, %v224_v36 }
 0x390   :  { %v305_v38 = vpop.f32.mrb[2].mxu0 }
 0x391   :  { %v306_v39 = vadd.f32 %v328_v37, %v305_v38  ;;  %v374_v40 = vpop.f32.mrb[3].mxu0 }
 0x393   :  { %309 = vst.msk [vmem:[#allocation5] sm:$0xff] %vm57_vm1, %v306_v39 }
 0x394   :  { %436 = shalt.err (!%p433_p12)
}
 0x395   :  { %s437_s10 = scalar_lea.hbm %s566_s6, 128 }
 0x396   :  { %p438_p13 = scmp.ne.s32.totalorder %s566_s6, %s437_s10  ;;  %p441_p0 = scmp.lt.u32.totalorder %s437_s10, %s566_s6 }
 0x398   :  { %p443_p1 = pnand %p441_p0, %p438_p13 }
 0x39a   :  { %446 = shalt.err (!%p443_p1)
}
 0x39b   :  { %319 = dma.vmem_to_hbm [thread:$0]  %s317_s8, 128, %s566_s6, [#allocation4]  }
 0x39c   :  { %449 = dma.done.wait [#allocation4], 128  }
 0x39d   :  { %450 = vsyncadd [#allocation4], 4294967168 }
 0x39e   :  { %323 = vsyncpa [#allocation3], 1 }
 0x39f   :  { %324 = vsyncpa [#allocation4], 1 }

</bundles_post_ra>
